<compile_context>
chip_gen: v5e
topology: v5e:2x2
jax: 0.10.0
libtpu: 0.0.40
codegen_flags: <defaults>
</compile_context>

<pallas_src>
import functools

import numpy as np
import jax
import jax.numpy as jnp
from jax.experimental import pallas as pl
from jax.experimental.pallas import tpu as pltpu

_LANE = 128          # TPU lane width: pad output matmul dims to this
_CUBIC_A = -0.75     # PyTorch bicubic coefficient


# ----------------------------------------------------------------------------
# Interpolation-matrix builders (PyTorch semantics), float64 numpy "glue".
# ----------------------------------------------------------------------------
def _nearest_matrix(out_size, in_size):
    # PyTorch legacy 'nearest': src = floor(dst * in / out)
    dst = np.arange(out_size)
    src = np.minimum((dst * in_size) // out_size, in_size - 1)
    M = np.zeros((out_size, in_size), np.float64)
    M[dst, src] = 1.0
    return M


def _linear_matrix(out_size, in_size, align_corners):
    dst = np.arange(out_size, dtype=np.float64)
    if align_corners:
        src = dst * (in_size - 1) / (out_size - 1) if out_size > 1 else np.zeros(out_size)
    else:
        src = (dst + 0.5) * in_size / out_size - 0.5
        src = np.maximum(src, 0.0)  # PyTorch clamps at 0 for linear
    i0 = np.clip(np.floor(src).astype(np.int64), 0, in_size - 1)
    i1 = np.minimum(i0 + 1, in_size - 1)
    w1 = src - i0
    w0 = 1.0 - w1
    M = np.zeros((out_size, in_size), np.float64)
    np.add.at(M, (np.arange(out_size), i0), w0)
    np.add.at(M, (np.arange(out_size), i1), w1)
    return M


def _cubic_weights(t):
    a = _CUBIC_A

    def c1(x):  # |x| <= 1
        return ((a + 2.0) * x - (a + 3.0)) * x * x + 1.0

    def c2(x):  # 1 < |x| < 2
        return ((a * x - 5.0 * a) * x + 8.0 * a) * x - 4.0 * a

    return np.stack([c2(t + 1.0), c1(t), c1(1.0 - t), c2(2.0 - t)], axis=-1)


def _cubic_matrix(out_size, in_size, align_corners):
    dst = np.arange(out_size, dtype=np.float64)
    if align_corners:
        src = dst * (in_size - 1) / (out_size - 1) if out_size > 1 else np.zeros(out_size)
    else:
        src = (dst + 0.5) * in_size / out_size - 0.5  # no clamp for cubic
    i = np.floor(src).astype(np.int64)
    t = src - i
    w = _cubic_weights(t)  # (out, 4) taps at i-1, i, i+1, i+2
    M = np.zeros((out_size, in_size), np.float64)
    rows = np.arange(out_size)
    for k in range(4):
        idx = np.clip(i - 1 + k, 0, in_size - 1)  # border replication
        np.add.at(M, (rows, idx), w[:, k])
    return M


# ----------------------------------------------------------------------------
# Per-step matrices mirroring Model.forward exactly, and their composition.
# ----------------------------------------------------------------------------
def _x_step_matrices(w_in):
    w = w_in
    mats = []

    def add(M):
        nonlocal w
        mats.append(M)
        w = M.shape[0]

    add(_nearest_matrix(16, w))               # size=16 (default nearest)
    add(_nearest_matrix(2 * w, w))            # scale=2 nearest
    add(_nearest_matrix(20, w))               # size=20 nearest
    add(_nearest_matrix(4 * w, w))            # scale=4 nearest
    add(_linear_matrix(16, w, False))         # size=16 linear
    add(_linear_matrix(2 * w, w, False))      # scale=2 linear
    add(_linear_matrix(24, w, True))          # size=24 linear align
    add(_linear_matrix(3 * w, w, True))       # scale=3 linear align
    return mats


def _y_step_matrices(h_in, w_in):
    h, w = h_in, w_in
    hs, ws = [], []

    def add(Mh, Mw):
        nonlocal h, w
        hs.append(Mh)
        ws.append(Mw)
        h, w = Mh.shape[0], Mw.shape[0]

    # nearest block
    add(_nearest_matrix(16, h), _nearest_matrix(16, w))
    add(_nearest_matrix(2 * h, h), _nearest_matrix(2 * w, w))
    add(_nearest_matrix(20, h), _nearest_matrix(20, w))
    add(_nearest_matrix(4 * h, h), _nearest_matrix(4 * w, w))
    add(_nearest_matrix(16, h), _nearest_matrix(24, w))
    add(_nearest_matrix(2 * h, h), _nearest_matrix(3 * w, w))
    # bilinear block
    add(_linear_matrix(16, h, False), _linear_matrix(16, w, False))
    add(_linear_matrix(2 * h, h, False), _linear_matrix(2 * w, w, False))
    add(_linear_matrix(20, h, False), _linear_matrix(20, w, False))
    add(_linear_matrix(4 * h, h, False), _linear_matrix(4 * w, w, False))
    add(_linear_matrix(16, h, True), _linear_matrix(24, w, True))
    add(_linear_matrix(2 * h, h, True), _linear_matrix(3 * w, w, True))
    # bicubic block
    add(_cubic_matrix(16, h, False), _cubic_matrix(16, w, False))
    add(_cubic_matrix(2 * h, h, False), _cubic_matrix(2 * w, w, False))
    add(_cubic_matrix(20, h, False), _cubic_matrix(20, w, False))
    add(_cubic_matrix(4 * h, h, False), _cubic_matrix(4 * w, w, False))
    add(_cubic_matrix(16, h, True), _cubic_matrix(24, w, True))
    add(_cubic_matrix(2 * h, h, True), _cubic_matrix(3 * w, w, True))
    return hs, ws


def _compose(mats):
    # M_total = M_n @ ... @ M_1  (float64 on host)
    return functools.reduce(lambda acc, M: M @ acc, mats[1:], mats[0])


# ----------------------------------------------------------------------------
# Cached device-side weight constants (built once per shape; no per-trace
# f64 kron / transpose work).  All weight matrices whose output feeds the
# kernel's stored results are zero-padded to a lane-dense 128-wide last dim.
# ----------------------------------------------------------------------------
@functools.lru_cache(maxsize=None)
def _x_weights(w_in):
    Mx = _compose(_x_step_matrices(w_in))                  # (Wx_out, w_in) f64
    wx_out = Mx.shape[0]
    assert wx_out <= _LANE
    mxT = np.zeros((w_in, _LANE), np.float32)
    mxT[:, :wx_out] = Mx.T.astype(np.float32)
    return jnp.asarray(mxT), wx_out


@functools.lru_cache(maxsize=None)
def _y_weights(n_images, h_in, w_in):
    hs, ws = _y_step_matrices(h_in, w_in)
    Mh = _compose(hs)                                      # (Hout, h_in) f64
    Mw = _compose(ws)                                      # (Wout, w_in) f64
    h_out, w_out = Mh.shape[0], Mw.shape[0]
    assert w_out <= _LANE
    # Block-diagonal H-resize: kron(I_{N*C}, Mh) keeps both y matmuls plain
    # 2-D (no in-kernel reshape / batched einsum), ~96 KiB instead of the
    # 1.33 MiB full Kronecker product.
    bd = np.kron(np.eye(n_images), Mh).astype(np.float32)  # (n*Hout, n*h_in)
    mwT = np.zeros((w_in, _LANE), np.float32)
    mwT[:, :w_out] = Mw.T.astype(np.float32)
    return jnp.asarray(bd), jnp.asarray(mwT), h_out, w_out


# ----------------------------------------------------------------------------
# Single fused, gridless Pallas kernel (everything resident in VMEM):
#   ox[m, o]        = sum_i  x[m, i]                  * MxT_pad[i, o]
#   t[(m,ho), wi]   = sum_hi BD[(m,ho),(m,hi)]        * y[(m,hi), wi]
#   oy[(m,ho), wo]  = sum_wi t[(m,ho), wi]            * MwT_pad[wi, wo]
# (m = flattened N*C image index; last dims are lane-dense 128.)
# ----------------------------------------------------------------------------
def _upsample_chain_kernel(x_ref, mxT_ref, yv_ref, bd_ref, mwT_ref,
                           ox_ref, oy_ref):
    ox_ref[...] = jnp.dot(x_ref[...], mxT_ref[...],
                          preferred_element_type=jnp.float32)
    t = jnp.dot(bd_ref[...], yv_ref[...],
                preferred_element_type=jnp.float32)
    oy_ref[...] = jnp.dot(t, mwT_ref[...],
                          preferred_element_type=jnp.float32)


def forward(x, y):
    N, C, Win = x.shape
    Ny, Cy, Hin, Winy = y.shape
    n_img = Ny * Cy

    mxT, wx_out = _x_weights(Win)                 # (Win, 128), 72
    bd, mwT, h_out, w_out = _y_weights(n_img, Hin, Winy)   # (256,96),(Winy,128)

    x2 = x.reshape(N * C, Win).astype(jnp.float32)          # (8, 12)
    yv = y.reshape(n_img * Hin, Winy).astype(jnp.float32)   # (96, 12)

    flops = 2 * (N * C * Win * _LANE
                 + (n_img * h_out) * (n_img * Hin) * Winy
                 + (n_img * h_out) * Winy * _LANE)
    bytes_accessed = 4 * (x2.size + mxT.size + yv.size + bd.size + mwT.size
                          + N * C * _LANE + n_img * h_out * _LANE)

    vmem = pltpu.MemorySpace.VMEM
    ox, oy = pl.pallas_call(
        _upsample_chain_kernel,
        out_shape=(
            jax.ShapeDtypeStruct((N * C, _LANE), jnp.float32),
            jax.ShapeDtypeStruct((n_img * h_out, _LANE), jnp.float32),
        ),
        in_specs=[pl.BlockSpec(memory_space=vmem)] * 5,
        out_specs=(
            pl.BlockSpec(memory_space=vmem),
            pl.BlockSpec(memory_space=vmem),
        ),
        cost_estimate=pl.CostEstimate(
            flops=flops, transcendentals=0, bytes_accessed=bytes_accessed),
    )(x2, mxT, yv, bd, mwT)

    out_x = ox[:, :wx_out].reshape(N, C, wx_out)
    out_y = oy.reshape(Ny, Cy, h_out, _LANE)[..., :w_out]
    return out_x, out_y


# ----------------------------------------------------------------------------
# Host-side float64 sequential reference (per-step matrices, no composition),
# used to validate the composed/fused kernel.
# ----------------------------------------------------------------------------
def _reference_forward_np(x_np, y_np):
    x64 = np.asarray(x_np, np.float64)
    y64 = np.asarray(y_np, np.float64)
    for M in _x_step_matrices(x_np.shape[-1]):
        x64 = np.einsum('ncw,ow->nco', x64, M)
    hs, ws = _y_step_matrices(y_np.shape[-2], y_np.shape[-1])
    for Mh, Mw in zip(hs, ws):
        y64 = np.einsum('oh,nchw->ncow', Mh, y64)
        y64 = np.einsum('nchw,ow->ncho', y64, Mw)
    return x64, y64


if __name__ == "__main__":
    key = jax.random.PRNGKey(0)
    kx, ky = jax.random.split(key)
    # Module has no parameters (empty __init__); only the two inputs.
    x = jax.random.normal(kx, (2, 4, 12), dtype=jnp.float32)        # NCW
    y = jax.random.normal(ky, (2, 4, 12, 12), dtype=jnp.float32)    # NCHW

    fwd = jax.jit(forward)
    out_x, out_y = fwd(x, y)
    jax.block_until_ready((out_x, out_y))

    assert out_x.shape == (2, 4, 72), out_x.shape
    assert out_y.shape == (2, 4, 32, 72), out_y.shape
    assert out_x.dtype == jnp.float32 and out_y.dtype == jnp.float32
    assert bool(jnp.all(jnp.isfinite(out_x))) and bool(jnp.all(jnp.isfinite(out_y)))

    # Correctness vs float64 sequential reference.  Tolerance accounts for the
    # MXU's default f32 matmul path on the (small-K) composed matrices.
    ref_x, ref_y = _reference_forward_np(np.asarray(x), np.asarray(y))
    np.testing.assert_allclose(np.asarray(out_x), ref_x, rtol=3e-2, atol=3e-2)
    np.testing.assert_allclose(np.asarray(out_y), ref_y, rtol=3e-2, atol=3e-2)

    print("KERNEL_OK")
</pallas_src>

<mosaic_0001>
module attributes {stable_mosaic.version = 11 : i64} {
  func.func @_upsample_chain_kernel(%arg0: memref<8x12xf32, #tpu.memory_space<vmem>>, %arg1: memref<12x128xf32, #tpu.memory_space<vmem>>, %arg2: memref<96x12xf32, #tpu.memory_space<vmem>>, %arg3: memref<256x96xf32, #tpu.memory_space<vmem>>, %arg4: memref<12x128xf32, #tpu.memory_space<vmem>>, %arg5: memref<8x128xf32, #tpu.memory_space<vmem>>, %arg6: memref<256x128xf32, #tpu.memory_space<vmem>>) attributes {dimension_semantics = [], scalar_prefetch = 0 : i64, scratch_operands = 0 : i64, tpu.core_type = #tpu.core_type<tc>} {
    %c0 = arith.constant 0 : index
    %c0_0 = arith.constant 0 : index
    %0 = vector.load %arg0[%c0, %c0_0] : memref<8x12xf32, #tpu.memory_space<vmem>>, vector<8x12xf32>
    %c0_1 = arith.constant 0 : index
    %c0_2 = arith.constant 0 : index
    %1 = vector.load %arg1[%c0_1, %c0_2] : memref<12x128xf32, #tpu.memory_space<vmem>>, vector<12x128xf32>
    %cst = arith.constant dense<0.000000e+00> : vector<8x128xf32>
    %2 = tpu.matmul %0, %1, %cst {dimension_numbers = #tpu.dot_dimension_numbers<[1], [0], [0], [1], [0, 0, 1, 1], [], []>} : vector<8x12xf32>, vector<12x128xf32>, vector<8x128xf32> -> vector<8x128xf32>
    %c0_3 = arith.constant 0 : index
    %c0_4 = arith.constant 0 : index
    %3 = vector.load %arg5[%c0_3, %c0_4] : memref<8x128xf32, #tpu.memory_space<vmem>>, vector<8x128xf32>
    tpu.vector_store %arg5[%c0_3, %c0_4], %2 {strides = array<i32>} : memref<8x128xf32, #tpu.memory_space<vmem>>, vector<8x128xf32>,
    %c0_5 = arith.constant 0 : index
    %c0_6 = arith.constant 0 : index
    %4 = vector.load %arg3[%c0_5, %c0_6] : memref<256x96xf32, #tpu.memory_space<vmem>>, vector<256x96xf32>
    %c0_7 = arith.constant 0 : index
    %c0_8 = arith.constant 0 : index
    %5 = vector.load %arg2[%c0_7, %c0_8] : memref<96x12xf32, #tpu.memory_space<vmem>>, vector<96x12xf32>
    %cst_9 = arith.constant dense<0.000000e+00> : vector<256x12xf32>
    %6 = tpu.matmul %4, %5, %cst_9 {dimension_numbers = #tpu.dot_dimension_numbers<[1], [0], [0], [1], [0, 0, 1, 1], [], []>} : vector<256x96xf32>, vector<96x12xf32>, vector<256x12xf32> -> vector<256x12xf32>
    %c0_10 = arith.constant 0 : index
    %c0_11 = arith.constant 0 : index
    %7 = vector.load %arg4[%c0_10, %c0_11] : memref<12x128xf32, #tpu.memory_space<vmem>>, vector<12x128xf32>
    %cst_12 = arith.constant dense<0.000000e+00> : vector<256x128xf32>
    %8 = tpu.matmul %6, %7, %cst_12 {dimension_numbers = #tpu.dot_dimension_numbers<[1], [0], [0], [1], [0, 0, 1, 1], [], []>} : vector<256x12xf32>, vector<12x128xf32>, vector<256x128xf32> -> vector<256x128xf32>
    %c0_13 = arith.constant 0 : index
    %c0_14 = arith.constant 0 : index
    %9 = vector.load %arg6[%c0_13, %c0_14] : memref<256x128xf32, #tpu.memory_space<vmem>>, vector<256x128xf32>
    tpu.vector_store %arg6[%c0_13, %c0_14], %8 {strides = array<i32>} : memref<256x128xf32, #tpu.memory_space<vmem>>, vector<256x128xf32>,
    return
  }
}

</mosaic_0001>

<bundles_post_ra>
// kernel: forward.1
= control target key start
LH: loop header
LB: loop body
LE: loop exit
PB: predicated region body
PF: predicated region fallthrough
CT: control target
= control target key end

     0   :  { %12 = vsyncpa [#allocation3], 0  ;;  %vm31_vm0 = vcmask 1043456   ;;  %vm27_vm1 = vcmask 97280   ;;  %s999_s0 = inlined_call_operand.vmem [shape: f32[8,12], index: 0, kind: input, shape index: {}]   ;;  %s1000_s1 = inlined_call_operand.vmem [shape: f32[12,128], index: 1, kind: input, shape index: {}]   ;;  %s1001_s2 = inlined_call_operand.vmem [shape: f32[96,12], index: 2, kind: input, shape index: {}]   ;;  %s1002_s3 = inlined_call_operand.vmem [shape: f32[256,96], index: 3, kind: input, shape index: {}]   ;;  %s1003_s4 = inlined_call_operand.vmem [shape: f32[12,128], index: 4, kind: input, shape index: {}]   ;;  %s1004_s5 = inlined_call_operand.hbm [shape: f32[8,128], index: 5, kind: output, shape index: {0}]   ;;  %s1005_s6 = inlined_call_operand.hbm [shape: f32[256,128], index: 6, kind: output, shape index: {1}]  }
   0x1   :  { %v26_v0 = vld [vmem:[%s1000_s1 + $0x8] sm:$0xf]  ;;  %v99_v1 = vld [vmem:[%s1001_s2 + $0x58] sm:$0xff]  ;;  %v25_v2 = vld [vmem:[%s1000_s1] sm:$0xff] }
   0x2   :  { %590 = vmatpush.msk.msra.mxu0 %vm31_vm0, %v26_v0  ;;  %657 = vmatpush.msra.mxu1 %v99_v1  ;;  %v98_v3 = vld [vmem:[%s1001_s2 + $0x50] sm:$0xff]  ;;  %v97_v4 = vld [vmem:[%s1001_s2 + $0x48] sm:$0xff]  ;;  %v24_v5 = vld [vmem:[%s999_s0] sm:$0xff] }
   0x3   :  { %658 = vmatpush.msra.mxu3 %v99_v1  ;;  %v96_v6 = vld [vmem:[%s1001_s2 + $0x40] sm:$0xff]  ;;  %v95_v7 = vld [vmem:[%s1001_s2 + $0x38] sm:$0xff] }
   0x4   :  { %50 = vmatpush.msra.mxu0 %v25_v2  ;;  %659 = vmatpush.msra.mxu1 %v98_v3 }
   0x5   :  { %660 = vmatpush.msra.mxu3 %v98_v3  ;;  %591 = vmatmul.msk.f32.vlgmr.msra.gmra.mxu0 %vm27_vm1, %v24_v5 }
   0x6   :  { %201 = vmatpush.msrb.mxu0 %v99_v1  ;;  %661 = vmatpush.msra.mxu1 %v97_v4 }
   0x7   :  { %662 = vmatpush.msra.mxu3 %v97_v4 }
   0x8   :  { %202 = vmatpush.msrb.mxu0 %v98_v3 }
   0x9   :  { %13 = vsyncpa [#allocation5], 0  ;;  %663 = vmatpush.msra.mxu1 %v96_v6  ;;  %v94_v8 = vld [vmem:[%s1001_s2 + $0x30] sm:$0xff]  ;;  %664 = vmatpush.msra.mxu3 %v96_v6  ;;  %v93_v9 = vld [vmem:[%s1001_s2 + $0x28] sm:$0xff]  ;;  %vm100_vm2 = vcmask 785408   ;;  %s563_s13 = sshll.u32 %s1004_s5, 4  ;;  %s564_s13 = int_to_ptr.hbm [resolvable:$true] %s563_s13 }
   0xa   :  { %203 = vmatpush.msrb.mxu0 %v97_v4  ;;  %v92_v10 = vld [vmem:[%s1001_s2 + $0x20] sm:$0xff]  ;;  %v91_v11 = vld [vmem:[%s1001_s2 + $0x18] sm:$0xff]  ;;  %v90_v12 = vld [vmem:[%s1001_s2 + $0x10] sm:$0xff]  ;;  %s740_s5 = smov [#allocation4]   ;;  %s573_s17 = sshll.u32 %s1005_s6, 4  ;;  %s574_s17 = int_to_ptr.hbm [resolvable:$true] %s573_s17 }
   0xb   :  { %665 = vmatpush.msra.mxu1 %v95_v7  ;;  %666 = vmatpush.msra.mxu3 %v95_v7  ;;  %v89_v13 = vld [vmem:[%s1001_s2 + $0x8] sm:$0xff]  ;;  %v88_v14 = vld [vmem:[%s1001_s2] sm:$0xff]  ;;  %v58_v17 = vld [vmem:[%s1002_s3 + $0x10] sm:$0xff]  ;;  %s571_s14 = sshll.u32 %s740_s5, 4  ;;  %s741_s18 = smov 128   ;;  %s572_s14 = int_to_ptr.vmem [resolvable:$true] %s571_s14 }
   0xc   :  { %204 = vmatpush.msrb.mxu0 %v96_v6  ;;  %v57_v15 = vld [vmem:[%s1002_s3 + $0x8] sm:$0xff]  ;;  %v56_v16 = vld [vmem:[%s1002_s3] sm:$0xff]  ;;  %v59_v18 = vld [vmem:[%s1002_s3 + $0x18] sm:$0xff]  ;;  %s742_s19 = smov 8  }
   0xd   :  { %667 = vmatpush.msra.mxu1 %v94_v8  ;;  %668 = vmatpush.msra.mxu3 %v94_v8  ;;  %v60_v19 = vld [vmem:[%s1002_s3 + $0x20] sm:$0xff]  ;;  %v61_v20 = vld [vmem:[%s1002_s3 + $0x28] sm:$0xff]  ;;  %v62_v21 = vld [vmem:[%s1002_s3 + $0x30] sm:$0xff] }
   0xe   :  { %205 = vmatpush.msrb.mxu0 %v95_v7  ;;  %v63_v22 = vld [vmem:[%s1002_s3 + $0x38] sm:$0xff]  ;;  %v64_v23 = vld [vmem:[%s1002_s3 + $0x40] sm:$0xff]  ;;  %v65_v24 = vld [vmem:[%s1002_s3 + $0x48] sm:$0xff] }
   0xf   :  { %669 = vmatpush.msra.mxu1 %v93_v9  ;;  %670 = vmatpush.msra.mxu3 %v93_v9  ;;  %v66_v25 = vld [vmem:[%s1002_s3 + $0x50] sm:$0xff]  ;;  %v67_v26 = vld [vmem:[%s1002_s3 + $0x58] sm:$0xff]  ;;  %v72_v27 = vld [vmem:[%s1002_s3 + $0x80] sm:$0xff] }
  0x10   :  { %206 = vmatpush.msrb.mxu0 %v94_v8  ;;  %v68_v28 = vld [vmem:[%s1002_s3 + $0x60] sm:$0xff]  ;;  %v73_v29 = vld [vmem:[%s1002_s3 + $0x88] sm:$0xff]  ;;  %v74_v33 = vld [vmem:[%s1002_s3 + $0x90] sm:$0xff] }
  0x11   :  { %671 = vmatpush.msra.mxu1 %v92_v10  ;;  %672 = vmatpush.msra.mxu3 %v92_v10  ;;  %v69_v30 = vld [vmem:[%s1002_s3 + $0x68] sm:$0xff]  ;;  %v310_v32 = vld [vmem:[%s1003_s4] sm:$0xff]  ;;  %v70_v34 = vld [vmem:[%s1002_s3 + $0x70] sm:$0xff] }
  0x12   :  { %207 = vmatpush.msrb.mxu0 %v93_v9  ;;  %v311_v31 = vld [vmem:[%s1003_s4 + $0x8] sm:$0xf]  ;;  %v75_v35 = vld [vmem:[%s1002_s3 + $0x98] sm:$0xff]  ;;  %v76_v38 = vld [vmem:[%s1002_s3 + $0xa0] sm:$0xff] }
  0x13   :  { %673 = vmatpush.msra.mxu1 %v91_v11  ;;  %674 = vmatpush.msra.mxu3 %v91_v11  ;;  %v71_v37 = vld [vmem:[%s1002_s3 + $0x78] sm:$0xff]  ;;  %v77_v39 = vld [vmem:[%s1002_s3 + $0xa8] sm:$0xff]  ;;  %v78_v42 = vld [vmem:[%s1002_s3 + $0xb0] sm:$0xff] }
  0x14   :  { %208 = vmatpush.msrb.mxu0 %v92_v10  ;;  %681 = vmatpush.msk.msra.mxu2 %vm31_vm0, %v311_v31  ;;  %v79_v44 = vld [vmem:[%s1002_s3 + $0xb8] sm:$0xff]  ;;  %v80_v46 = vld [vmem:[%s1002_s3 + $0xc0] sm:$0xff]  ;;  %v81_v48 = vld [vmem:[%s1002_s3 + $0xc8] sm:$0xff] }
  0x15   :  { %675 = vmatpush.msra.mxu1 %v90_v12  ;;  %676 = vmatpush.msra.mxu3 %v90_v12  ;;  %v82_v50 = vld [vmem:[%s1002_s3 + $0xd0] sm:$0xff]  ;;  %v83_v52 = vld [vmem:[%s1002_s3 + $0xd8] sm:$0xff]  ;;  %v84_v54 = vld [vmem:[%s1002_s3 + $0xe0] sm:$0xff] }
  0x16   :  { %209 = vmatpush.msrb.mxu0 %v91_v11  ;;  %682 = vmatpush.msra.mxu2 %v310_v32  ;;  %v85_v56 = vld [vmem:[%s1002_s3 + $0xe8] sm:$0xff]  ;;  %v86_v58 = vld [vmem:[%s1002_s3 + $0xf0] sm:$0xff]  ;;  %v87_v60 = vld [vmem:[%s1002_s3 + $0xf8] sm:$0xff]  ;;  %s739_s3 = smov [#allocation2]  }
  0x17   :  { %677 = vmatpush.msra.mxu1 %v89_v13  ;;  %678 = vmatpush.msra.mxu3 %v89_v13  ;;  %s561_s12 = sshll.u32 %s739_s3, 4  ;;  %s562_s12 = int_to_ptr.vmem [resolvable:$true] %s561_s12 }
  0x18   :  { %210 = vmatpush.msrb.mxu0 %v90_v12 }
  0x19   :  { %679 = vmatpush.msra.mxu1 %v88_v14  ;;  %680 = vmatpush.msra.mxu3 %v88_v14 }
  0x1a   :  { %211 = vmatpush.msrb.mxu0 %v89_v13  ;;  %593 = vmatmul.msk.f32.vlgmr.msra.gmra.mxu1 %vm100_vm2, %v57_v15 }
  0x1b   :  { %608 = vmatmul.msk.f32.vlgmr.msra.gmra.mxu3 %vm100_vm2, %v72_v27 }
  0x1c   :  { %212 = vmatpush.msrb.mxu0 %v88_v14 }
  0x1d   :  { %592 = vmatmul.msk.f32.vlgmr.msrb.gmra.mxu0 %vm100_vm2, %v56_v16 }
  0x1e   :  { %624 = vmatpush.msk.msra.mxu0 %vm31_vm0, %v311_v31 }
  0x20   :  { %426 = vmatpush.msra.mxu0 %v310_v32 }
  0x22   :  { %594 = vmatmul.msk.f32.gmra.mxu1 %vm100_vm2, %v58_v17 }
  0x23   :  { %609 = vmatmul.msk.f32.gmra.mxu3 %vm100_vm2, %v73_v29 }
  0x2a   :  { %595 = vmatmul.msk.f32.gmra.mxu1 %vm100_vm2, %v59_v18 }
  0x2b   :  { %610 = vmatmul.msk.f32.gmra.mxu3 %vm100_vm2, %v74_v33 }
  0x32   :  { %596 = vmatmul.msk.f32.gmra.mxu1 %vm100_vm2, %v60_v19 }
  0x33   :  { %611 = vmatmul.msk.f32.gmra.mxu3 %vm100_vm2, %v75_v35 }
  0x3a   :  { %597 = vmatmul.msk.f32.gmra.mxu1 %vm100_vm2, %v61_v20 }
  0x3b   :  { %612 = vmatmul.msk.f32.gmra.mxu3 %vm100_vm2, %v76_v38 }
  0x42   :  { %598 = vmatmul.msk.f32.gmra.mxu1 %vm100_vm2, %v62_v21 }
  0x43   :  { %613 = vmatmul.msk.f32.gmra.mxu3 %vm100_vm2, %v77_v39 }
  0x4a   :  { %599 = vmatmul.msk.f32.gmra.mxu1 %vm100_vm2, %v63_v22 }
  0x4b   :  { %614 = vmatmul.msk.f32.gmra.mxu3 %vm100_vm2, %v78_v42 }
  0x52   :  { %600 = vmatmul.msk.f32.gmra.mxu1 %vm100_vm2, %v64_v23 }
  0x53   :  { %615 = vmatmul.msk.f32.gmra.mxu3 %vm100_vm2, %v79_v44 }
  0x5a   :  { %601 = vmatmul.msk.f32.gmra.mxu1 %vm100_vm2, %v65_v24 }
  0x5b   :  { %616 = vmatmul.msk.f32.gmra.mxu3 %vm100_vm2, %v80_v46 }
  0x62   :  { %602 = vmatmul.msk.f32.gmra.mxu1 %vm100_vm2, %v66_v25 }
  0x63   :  { %617 = vmatmul.msk.f32.gmra.mxu3 %vm100_vm2, %v81_v48 }
  0x6a   :  { %603 = vmatmul.msk.f32.gmra.mxu1 %vm100_vm2, %v67_v26 }
  0x6b   :  { %618 = vmatmul.msk.f32.gmra.mxu3 %vm100_vm2, %v82_v50 }
  0x72   :  { %604 = vmatmul.msk.f32.gmra.mxu1 %vm100_vm2, %v68_v28 }
  0x73   :  { %619 = vmatmul.msk.f32.gmra.mxu3 %vm100_vm2, %v83_v52 }
  0x7a   :  { %605 = vmatmul.msk.f32.gmra.mxu1 %vm100_vm2, %v69_v30 }
  0x7b   :  { %620 = vmatmul.msk.f32.gmra.mxu3 %vm100_vm2, %v84_v54 }
  0x82   :  { %606 = vmatmul.msk.f32.gmra.mxu1 %vm100_vm2, %v70_v34  ;;  %v52_v36 = vpop.f32.mrf.mxu0 }
  0x83   :  { %55 = vst [vmem:[#allocation2] sm:$0xff] %v52_v36  ;;  %621 = vmatmul.msk.f32.gmra.mxu3 %vm100_vm2, %v85_v56 }
  0x84   :  { %566 = dma.vmem_to_hbm [thread:$0]  %s562_s12, 128, %s564_s13, [#allocation3]  }
  0x8a   :  { %607 = vmatmul.msk.f32.gmra.mxu1 %vm100_vm2, %v71_v37 }
  0x8b   :  { %622 = vmatmul.msk.f32.gmra.mxu3 %vm100_vm2, %v86_v58 }
  0x93   :  { %623 = vmatmul.msk.f32.gmra.mxu3 %vm100_vm2, %v87_v60 }
  0x97   :  { %v217_v40 = vpop.f32.mrf.mxu1 }
  0x9a   :  { %v214_v41 = vpop.f32.mrf.mxu0 }
  0x9b   :  { %625 = vmatmul.msk.f32.vlgmr.msra.gmra.mxu0 %vm27_vm1, %v214_v41 }
  0x9e   :  { %v262_v63 = vpop.f32.mrf.mxu3 }
  0x9f   :  { %v220_v43 = vpop.f32.mrf.mxu1 }
  0xa3   :  { %626 = vmatmul.msk.f32.gmra.mxu0 %vm27_vm1, %v217_v40 }
  0xa6   :  { %v265_v1 = vpop.f32.mrf.mxu3 }
  0xa7   :  { %v223_v45 = vpop.f32.mrf.mxu1 }
  0xab   :  { %627 = vmatmul.msk.f32.gmra.mxu0 %vm27_vm1, %v220_v43 }
  0xae   :  { %v268_v3 = vpop.f32.mrf.mxu3 }
  0xaf   :  { %v226_v47 = vpop.f32.mrf.mxu1 }
  0xb3   :  { %628 = vmatmul.msk.f32.gmra.mxu0 %vm27_vm1, %v223_v45 }
  0xb6   :  { %v271_v5 = vpop.f32.mrf.mxu3 }
  0xb7   :  { %v229_v49 = vpop.f32.mrf.mxu1 }
  0xbb   :  { %629 = vmatmul.msk.f32.gmra.mxu0 %vm27_vm1, %v226_v47 }
  0xbe   :  { %v274_v6 = vpop.f32.mrf.mxu3 }
  0xbf   :  { %v232_v51 = vpop.f32.mrf.mxu1 }
  0xc3   :  { %630 = vmatmul.msk.f32.gmra.mxu0 %vm27_vm1, %v229_v49 }
  0xc6   :  { %v277_v9 = vpop.f32.mrf.mxu3 }
  0xc7   :  { %v235_v53 = vpop.f32.mrf.mxu1 }
  0xcb   :  { %631 = vmatmul.msk.f32.gmra.mxu0 %vm27_vm1, %v232_v51 }
  0xce   :  { %v280_v11 = vpop.f32.mrf.mxu3 }
  0xcf   :  { %v238_v55 = vpop.f32.mrf.mxu1 }
  0xd3   :  { %632 = vmatmul.msk.f32.gmra.mxu0 %vm27_vm1, %v235_v53 }
  0xd6   :  { %v283_v13 = vpop.f32.mrf.mxu3 }
  0xd7   :  { %v241_v57 = vpop.f32.mrf.mxu1 }
  0xdb   :  { %633 = vmatmul.msk.f32.gmra.mxu0 %vm27_vm1, %v238_v55 }
  0xde   :  { %v286_v15 = vpop.f32.mrf.mxu3 }
  0xdf   :  { %v244_v59 = vpop.f32.mrf.mxu1 }
  0xe3   :  { %634 = vmatmul.msk.f32.gmra.mxu0 %vm27_vm1, %v241_v57 }
  0xe6   :  { %v289_v18 = vpop.f32.mrf.mxu3 }
  0xe7   :  { %v247_v61 = vpop.f32.mrf.mxu1 }
  0xeb   :  { %635 = vmatmul.msk.f32.gmra.mxu0 %vm27_vm1, %v244_v59 }
  0xee   :  { %v292_v20 = vpop.f32.mrf.mxu3 }
  0xef   :  { %v250_v62 = vpop.f32.mrf.mxu1 }
  0xf3   :  { %636 = vmatmul.msk.f32.gmra.mxu0 %vm27_vm1, %v247_v61 }
  0xf6   :  { %v295_v22 = vpop.f32.mrf.mxu3 }
  0xf7   :  { %v253_v0 = vpop.f32.mrf.mxu1 }
  0xfb   :  { %637 = vmatmul.msk.f32.gmra.mxu0 %vm27_vm1, %v250_v62 }
  0xfe   :  { %v298_v24 = vpop.f32.mrf.mxu3 }
  0xff   :  { %v256_v2 = vpop.f32.mrf.mxu1 }
 0x100   :  { %639 = vmatmul.msk.f32.vlgmr.msra.gmra.mxu2 %vm27_vm1, %v256_v2 }
 0x103   :  { %638 = vmatmul.msk.f32.gmra.mxu0 %vm27_vm1, %v253_v0 }
 0x106   :  { %v301_v27 = vpop.f32.mrf.mxu3 }
 0x107   :  { %v259_v4 = vpop.f32.mrf.mxu1 }
 0x108   :  { %640 = vmatmul.msk.f32.gmra.mxu2 %vm27_vm1, %v259_v4 }
 0x10e   :  { %v304_v29 = vpop.f32.mrf.mxu3 }
 0x110   :  { %641 = vmatmul.msk.f32.gmra.mxu2 %vm27_vm1, %v262_v63 }
 0x116   :  { %v307_v32 = vpop.f32.mrf.mxu3 }
 0x118   :  { %v428_v7 = vpop.f32.mrf.mxu0  ;;  %642 = vmatmul.msk.f32.gmra.mxu2 %vm27_vm1, %v265_v1 }
 0x119   :  { %524 = vst [vmem:[#allocation4] sm:$0xff] %v428_v7 }
 0x120   :  { %v431_v8 = vpop.f32.mrf.mxu0  ;;  %643 = vmatmul.msk.f32.gmra.mxu2 %vm27_vm1, %v268_v3 }
 0x121   :  { %525 = vst [vmem:[#allocation4 + $0x8] sm:$0xff] %v431_v8 }
 0x128   :  { %v434_v10 = vpop.f32.mrf.mxu0  ;;  %644 = vmatmul.msk.f32.gmra.mxu2 %vm27_vm1, %v271_v5 }
 0x129   :  { %526 = vst [vmem:[#allocation4 + $0x10] sm:$0xff] %v434_v10 }
 0x130   :  { %v437_v12 = vpop.f32.mrf.mxu0  ;;  %645 = vmatmul.msk.f32.gmra.mxu2 %vm27_vm1, %v274_v6 }
 0x131   :  { %527 = vst [vmem:[#allocation4 + $0x18] sm:$0xff] %v437_v12 }
 0x138   :  { %v440_v14 = vpop.f32.mrf.mxu0  ;;  %646 = vmatmul.msk.f32.gmra.mxu2 %vm27_vm1, %v277_v9 }
 0x139   :  { %528 = vst [vmem:[#allocation4 + $0x20] sm:$0xff] %v440_v14 }
 0x140   :  { %v443_v16 = vpop.f32.mrf.mxu0  ;;  %647 = vmatmul.msk.f32.gmra.mxu2 %vm27_vm1, %v280_v11 }
 0x141   :  { %529 = vst [vmem:[#allocation4 + $0x28] sm:$0xff] %v443_v16 }
 0x148   :  { %v446_v17 = vpop.f32.mrf.mxu0  ;;  %648 = vmatmul.msk.f32.gmra.mxu2 %vm27_vm1, %v283_v13 }
 0x149   :  { %530 = vst [vmem:[#allocation4 + $0x30] sm:$0xff] %v446_v17 }
 0x150   :  { %v449_v19 = vpop.f32.mrf.mxu0  ;;  %649 = vmatmul.msk.f32.gmra.mxu2 %vm27_vm1, %v286_v15 }
 0x151   :  { %531 = vst [vmem:[#allocation4 + $0x38] sm:$0xff] %v449_v19 }
 0x158   :  { %v452_v21 = vpop.f32.mrf.mxu0  ;;  %650 = vmatmul.msk.f32.gmra.mxu2 %vm27_vm1, %v289_v18 }
 0x159   :  { %532 = vst [vmem:[#allocation4 + $0x40] sm:$0xff] %v452_v21 }
 0x160   :  { %v455_v23 = vpop.f32.mrf.mxu0  ;;  %651 = vmatmul.msk.f32.gmra.mxu2 %vm27_vm1, %v292_v20 }
 0x161   :  { %533 = vst [vmem:[#allocation4 + $0x48] sm:$0xff] %v455_v23 }
 0x168   :  { %v458_v25 = vpop.f32.mrf.mxu0  ;;  %652 = vmatmul.msk.f32.gmra.mxu2 %vm27_vm1, %v295_v22 }
 0x169   :  { %534 = vst [vmem:[#allocation4 + $0x50] sm:$0xff] %v458_v25 }
 0x170   :  { %v461_v26 = vpop.f32.mrf.mxu0  ;;  %653 = vmatmul.msk.f32.gmra.mxu2 %vm27_vm1, %v298_v24 }
 0x171   :  { %535 = vst [vmem:[#allocation4 + $0x58] sm:$0xff] %v461_v26 }
 0x178   :  { %v464_v28 = vpop.f32.mrf.mxu0  ;;  %654 = vmatmul.msk.f32.gmra.mxu2 %vm27_vm1, %v301_v27 }
 0x179   :  { %536 = vst [vmem:[#allocation4 + $0x60] sm:$0xff] %v464_v28 }
 0x180   :  { %v467_v30 = vpop.f32.mrf.mxu0  ;;  %655 = vmatmul.msk.f32.gmra.mxu2 %vm27_vm1, %v304_v29 }
 0x181   :  { %537 = vst [vmem:[#allocation4 + $0x68] sm:$0xff] %v467_v30 }
 0x183   :  { %v470_v31 = vpop.f32.mrf.mxu2 }
 0x184   :  { %538 = vst [vmem:[#allocation4 + $0x70] sm:$0xff] %v470_v31 }
 0x188   :  { %656 = vmatmul.msk.f32.gmra.mxu2 %vm27_vm1, %v307_v32 }
 0x18b   :  { %v473_v33 = vpop.f32.mrf.mxu2 }
 0x18c   :  { %539 = vst [vmem:[#allocation4 + $0x78] sm:$0xff] %v473_v33 }
 0x193   :  { %v476_v34 = vpop.f32.mrf.mxu2 }
 0x194   :  { %540 = vst [vmem:[#allocation4 + $0x80] sm:$0xff] %v476_v34 }
 0x19b   :  { %v479_v35 = vpop.f32.mrf.mxu2 }
 0x19c   :  { %541 = vst [vmem:[#allocation4 + $0x88] sm:$0xff] %v479_v35 }
 0x1a3   :  { %v482_v36 = vpop.f32.mrf.mxu2 }
 0x1a4   :  { %542 = vst [vmem:[#allocation4 + $0x90] sm:$0xff] %v482_v36 }
 0x1ab   :  { %v485_v37 = vpop.f32.mrf.mxu2 }
 0x1ac   :  { %543 = vst [vmem:[#allocation4 + $0x98] sm:$0xff] %v485_v37 }
 0x1b3   :  { %v488_v38 = vpop.f32.mrf.mxu2 }
 0x1b4   :  { %544 = vst [vmem:[#allocation4 + $0xa0] sm:$0xff] %v488_v38 }
 0x1bb   :  { %v491_v39 = vpop.f32.mrf.mxu2 }
 0x1bc   :  { %545 = vst [vmem:[#allocation4 + $0xa8] sm:$0xff] %v491_v39 }
 0x1c3   :  { %v494_v40 = vpop.f32.mrf.mxu2 }
 0x1c4   :  { %546 = vst [vmem:[#allocation4 + $0xb0] sm:$0xff] %v494_v40 }
 0x1cb   :  { %v497_v41 = vpop.f32.mrf.mxu2 }
 0x1cc   :  { %547 = vst [vmem:[#allocation4 + $0xb8] sm:$0xff] %v497_v41 }
 0x1d3   :  { %v500_v42 = vpop.f32.mrf.mxu2 }
 0x1d4   :  { %548 = vst [vmem:[#allocation4 + $0xc0] sm:$0xff] %v500_v42 }
 0x1db   :  { %v503_v43 = vpop.f32.mrf.mxu2 }
 0x1dc   :  { %549 = vst [vmem:[#allocation4 + $0xc8] sm:$0xff] %v503_v43 }
 0x1e3   :  { %v506_v44 = vpop.f32.mrf.mxu2 }
 0x1e4   :  { %550 = vst [vmem:[#allocation4 + $0xd0] sm:$0xff] %v506_v44 }
 0x1eb   :  { %v509_v45 = vpop.f32.mrf.mxu2 }
 0x1ec   :  { %551 = vst [vmem:[#allocation4 + $0xd8] sm:$0xff] %v509_v45 }
 0x1f3   :  { %v512_v46 = vpop.f32.mrf.mxu2 }
 0x1f4   :  { %552 = vst [vmem:[#allocation4 + $0xe0] sm:$0xff] %v512_v46 }
 0x1fb   :  { %v515_v47 = vpop.f32.mrf.mxu2 }
 0x1fc   :  { %553 = vst [vmem:[#allocation4 + $0xe8] sm:$0xff] %v515_v47 }
 0x203   :  { %v518_v48 = vpop.f32.mrf.mxu2 }
 0x204   :  { %554 = vst [vmem:[#allocation4 + $0xf0] sm:$0xff] %v518_v48 }
 0x20b   :  { %v521_v49 = vpop.f32.mrf.mxu2 }
 0x20c   :  { %555 = vst [vmem:[#allocation4 + $0xf8] sm:$0xff] %v521_v49 }
 0x20d   :  { %579 = dma.vmem_to_hbm [thread:$0]  %s572_s14, 4096, %s574_s17, [#allocation5], %s741_s18, %s741_s18, %s742_s19  }
 0x20e   :  { %735 = dma.done.wait [#allocation3], 128  }
 0x20f   :  { %736 = vsyncadd [#allocation3], 4294967168 }
 0x210   :  { %737 = dma.done.wait [#allocation5], 4096  }
 0x211   :  { %738 = vsyncadd [#allocation5], 4294963200 }
 0x212   :  { %588 = vsyncpa [#allocation3], 1 }
 0x213   :  { %589 = vsyncpa [#allocation5], 1 }

</bundles_post_ra>
